<compile_context>
chip_gen: v6e
topology: v6e:2x2x1
jax: 0.10.0
libtpu: 0.0.40
codegen_flags: <defaults>
</compile_context>

<pallas_src>
import functools

import jax
import jax.numpy as jnp
from jax.experimental import pallas as pl
from jax.experimental.pallas import tpu as pltpu

F_PAD = 128   # feature channels padded to a full lane width
C_PAD = 128   # class logits padded to a full lane width
K_PAD = 32    # im2col contraction dim (3*3*3 = 27) padded


# ----------------------------------------------------------------------------
# Fused kernel: conv-as-matmul + bias + ReLU + (HW, clip) mean + new_fc
# grid = (B, T, R): clip (parallel), frame-in-clip, row-tile-in-frame.
# ----------------------------------------------------------------------------
def _fused_video_kernel(p_ref, cw_ref, cb_ref, fw_ref, fb_ref, o_ref, acc_ref):
    t = pl.program_id(1)
    r = pl.program_id(2)

    @pl.when((t == 0) & (r == 0))
    def _init():
        acc_ref[...] = jnp.zeros_like(acc_ref)

    # conv as matmul on this row tile: (tile_rows, K_PAD) @ (K_PAD, F_PAD)
    pre = jnp.dot(p_ref[...], cw_ref[...], preferred_element_type=jnp.float32)
    act = jnp.maximum(pre + cb_ref[...], 0.0)
    # pooled-sum contribution of this tile (broadcast over the 8 acc rows)
    acc_ref[...] += jnp.sum(act, axis=0, keepdims=True)

    @pl.when((t == pl.num_programs(1) - 1) & (r == pl.num_programs(2) - 1))
    def _finalize():
        # 1/(H*W*T) is folded into fw outside the kernel, so acc @ fw is the
        # FC of the clip-averaged pooled feature.  All 8 acc rows are equal.
        feat = acc_ref[...].astype(jnp.bfloat16)               # (8, F_PAD)
        logits = jnp.dot(feat, fw_ref[...],
                         preferred_element_type=jnp.float32)   # (8, C_PAD)
        o_ref[...] = logits + fb_ref[...]


def _fused_call(patches, conv_w, conv_b, fc_w, fc_b, *, B, T, R, tile_rows):
    return pl.pallas_call(
        _fused_video_kernel,
        out_shape=jax.ShapeDtypeStruct((B * 8, C_PAD), jnp.float32),
        grid_spec=pltpu.PrefetchScalarGridSpec(
            num_scalar_prefetch=0,
            grid=(B, T, R),
            in_specs=[
                # im2col patch rows for (clip b, frame t, row-tile r)
                pl.BlockSpec((tile_rows, K_PAD),
                             lambda b, t, r: ((b * T + t) * R + r, 0)),
                pl.BlockSpec((K_PAD, F_PAD), lambda b, t, r: (0, 0)),
                pl.BlockSpec((1, F_PAD), lambda b, t, r: (0, 0)),
                pl.BlockSpec((F_PAD, C_PAD), lambda b, t, r: (0, 0)),
                pl.BlockSpec((1, C_PAD), lambda b, t, r: (0, 0)),
            ],
            out_specs=pl.BlockSpec((8, C_PAD), lambda b, t, r: (b, 0)),
            scratch_shapes=[pltpu.VMEM((8, F_PAD), jnp.float32)],
        ),
        compiler_params=pltpu.CompilerParams(
            dimension_semantics=("parallel", "arbitrary", "arbitrary")),
    )(patches, conv_w, conv_b, fc_w, fc_b)


# ----------------------------------------------------------------------------
# Plain-JAX glue: im2col patch extraction, parameter setup, reshapes
# ----------------------------------------------------------------------------
def im2col_3x3(x):
    """x: (N, C, H, W) NCHW, 3x3 conv, stride 1, pad 1 -> (N*H*W, C*9).

    Patch column ordering is (c, dy, dx), matching conv_w.reshape(F, C*9)."""
    n, c, h, w = x.shape
    xp = jnp.pad(x, ((0, 0), (0, 0), (1, 1), (1, 1)))
    cols = []
    for ci in range(c):
        for dy in range(3):
            for dx in range(3):
                cols.append(xp[:, ci, dy:dy + h, dx:dx + w])
    patches = jnp.stack(cols, axis=-1)          # (N, H, W, C*9)
    return patches.reshape(n * h * w, c * 9)


def init_params(key, *, c_in, feature_dim, num_class):
    k_conv, k_fc = jax.random.split(key)
    # stand-in backbone trunk conv
    conv_w = jax.random.normal(k_conv, (feature_dim, c_in, 3, 3),
                               jnp.float32) * 0.1
    conv_b = jnp.zeros((feature_dim,), jnp.float32)
    # new_fc: normal_(weight, 0, 0.001), constant_(bias, 0)  (as in the module)
    fc_w = jax.random.normal(k_fc, (num_class, feature_dim),
                             jnp.float32) * 0.001
    fc_b = jnp.zeros((num_class,), jnp.float32)
    return dict(conv_w=conv_w, conv_b=conv_b, fc_w=fc_w, fc_b=fc_b)


@functools.partial(jax.jit, static_argnames=("clip_length",))
def video_model_forward(x, params, *, clip_length):
    """x: (B, clip_length*3, H, W) NCHW float32 -> (B, num_class)."""
    B = x.shape[0]
    H, W = x.shape[-2], x.shape[-1]
    sample_len = 3  # RGB modality, new_length = 1
    x = x.reshape(-1, sample_len, H, W)                 # (B*T, 3, H, W)
    T = clip_length
    feature_dim = params["conv_w"].shape[0]
    num_class = params["fc_w"].shape[0]
    assert feature_dim <= F_PAD and num_class <= C_PAD

    # ---- row tiling of the per-frame pixel axis (divides exactly) ----
    th = H
    while th * W > 2048 and th % 2 == 0:
        th //= 2
    R = H // th
    tile_rows = th * W
    assert tile_rows % 8 == 0, "row tile must be sublane aligned"

    # ---- im2col patches, K padded to 32 lanes, bf16 operands for the MXU ----
    # TODO(synk): build the 3x3 halo patches inside the kernel (NHWC tile +
    # shifted slices) instead of materializing the im2col buffer in HBM.
    patches = im2col_3x3(x)                             # (N*H*W, 27)
    patches = jnp.pad(patches, ((0, 0), (0, K_PAD - patches.shape[1])))
    patches = patches.astype(jnp.bfloat16)

    # ---- parameters: lane-dense (128-padded), bf16 matmul operands ----
    cw = params["conv_w"].reshape(feature_dim, -1).T    # (27, feature_dim)
    cw = jnp.pad(cw, ((0, K_PAD - cw.shape[0]), (0, F_PAD - feature_dim)))
    cw = cw.astype(jnp.bfloat16)
    cb = jnp.pad(params["conv_b"], (0, F_PAD - feature_dim))[None, :]

    inv = 1.0 / float(H * W * T)        # GAP mean * clip mean, folded into fw
    fw = params["fc_w"].T * inv                         # (feature_dim, n_cls)
    fw = jnp.pad(fw, ((0, F_PAD - feature_dim), (0, C_PAD - num_class)))
    fw = fw.astype(jnp.bfloat16)
    fb = jnp.pad(params["fc_b"], (0, C_PAD - num_class))[None, :]

    # ---- Dropout(p=0.8) replacing base_model.fc: identity at inference ----
    # TODO(synk): training-mode dropout masking not implemented (eval forward).

    out = _fused_call(patches, cw, cb, fw, fb,
                      B=B, T=T, R=R, tile_rows=tile_rows)   # (B*8, C_PAD)
    return out.reshape(B, 8, C_PAD)[:, 0, :num_class]


def reference_forward(x, params, clip_length):
    """Pure f32 JAX reference of the same forward (for validation)."""
    B = x.shape[0]
    H, W = x.shape[-2], x.shape[-1]
    xr = x.reshape(-1, 3, H, W)
    n_frames = xr.shape[0]
    feature_dim = params["conv_w"].shape[0]
    num_class = params["fc_w"].shape[0]
    patches = im2col_3x3(xr)
    wmat = params["conv_w"].reshape(feature_dim, -1).T
    conv = jnp.maximum(patches @ wmat + params["conv_b"][None, :], 0.0)
    feats = conv.reshape(n_frames, H * W, feature_dim).mean(axis=1)
    logits = feats @ params["fc_w"].T + params["fc_b"][None, :]
    return logits.reshape(B, clip_length, num_class).mean(axis=1)


if __name__ == "__main__":
    B, T, C_in, H, W = 2, 4, 3, 16, 16
    feature_dim, num_class = 64, 8

    key = jax.random.PRNGKey(0)
    k_x, k_p = jax.random.split(key)
    x = jax.random.normal(k_x, (B, T * C_in, H, W), jnp.float32)
    params = init_params(k_p, c_in=C_in, feature_dim=feature_dim,
                         num_class=num_class)

    out = video_model_forward(x, params, clip_length=T)
    out = jax.block_until_ready(out)
    assert out.shape == (B, num_class), out.shape
    assert bool(jnp.all(jnp.isfinite(out)))

    ref = reference_forward(x, params, T)
    max_err = float(jnp.max(jnp.abs(out - ref)))
    assert max_err < 5e-4, f"mismatch vs f32 reference: {max_err}"
    print("KERNEL_OK")
</pallas_src>

<mosaic_0001>
module attributes {stable_mosaic.version = 11 : i64} {
  func.func @_fused_video_kernel(%arg0: i32, %arg1: i32, %arg2: i32, %arg3: memref<256x32xbf16, #tpu.memory_space<vmem>>, %arg4: memref<32x128xbf16, #tpu.memory_space<vmem>>, %arg5: memref<1x128xf32, #tpu.memory_space<vmem>>, %arg6: memref<128x128xbf16, #tpu.memory_space<vmem>>, %arg7: memref<1x128xf32, #tpu.memory_space<vmem>>, %arg8: memref<8x128xf32, #tpu.memory_space<vmem>>, %arg9: memref<8x128xf32, #tpu.memory_space<vmem>>) attributes {dimension_semantics = [#tpu.dimension_semantics<parallel>, #tpu.dimension_semantics<arbitrary>, #tpu.dimension_semantics<arbitrary>], iteration_bounds = array<i64: 2, 4, 1>, scalar_prefetch = 0 : i64, scratch_operands = 1 : i64, tpu.core_type = #tpu.core_type<tc>, window_params = [{transform_indices = @transform_0, window_bounds = array<i64: 256, 32>}, {pipeline_mode = #tpu.pipeline_mode<synchronous>, transform_indices = @transform_1, window_bounds = array<i64: 32, 128>}, {pipeline_mode = #tpu.pipeline_mode<synchronous>, transform_indices = @transform_2, window_bounds = array<i64: 1, 128>}, {pipeline_mode = #tpu.pipeline_mode<synchronous>, transform_indices = @transform_3, window_bounds = array<i64: 128, 128>}, {pipeline_mode = #tpu.pipeline_mode<synchronous>, transform_indices = @transform_4, window_bounds = array<i64: 1, 128>}, {transform_indices = @transform_5, window_bounds = array<i64: 8, 128>}]} {
    %c0_i32 = arith.constant 0 : i32
    %0 = arith.cmpi eq, %arg1, %c0_i32 : i32
    %c0_i32_0 = arith.constant 0 : i32
    %1 = arith.cmpi eq, %arg2, %c0_i32_0 : i32
    %2 = arith.andi %0, %1 : i1
    %3 = arith.extui %2 : i1 to i32
    %c0_i32_1 = arith.constant 0 : i32
    %4 = arith.cmpi ne, %3, %c0_i32_1 : i32
    scf.if %4 {
      %cst_15 = arith.constant 0.000000e+00 : f32
      %24 = vector.broadcast %cst_15 : f32 to vector<8x128xf32>
      %c0_16 = arith.constant 0 : index
      %c0_17 = arith.constant 0 : index
      %25 = vector.load %arg9[%c0_16, %c0_17] : memref<8x128xf32, #tpu.memory_space<vmem>>, vector<8x128xf32>
      tpu.vector_store %arg9[%c0_16, %c0_17], %24 {strides = array<i32>} : memref<8x128xf32, #tpu.memory_space<vmem>>, vector<8x128xf32>,
    } else {
    }
    %c0 = arith.constant 0 : index
    %c0_2 = arith.constant 0 : index
    %5 = vector.load %arg3[%c0, %c0_2] : memref<256x32xbf16, #tpu.memory_space<vmem>>, vector<256x32xbf16>
    %c0_3 = arith.constant 0 : index
    %c0_4 = arith.constant 0 : index
    %6 = vector.load %arg4[%c0_3, %c0_4] : memref<32x128xbf16, #tpu.memory_space<vmem>>, vector<32x128xbf16>
    %cst = arith.constant dense<0.000000e+00> : vector<256x128xf32>
    %7 = tpu.matmul %5, %6, %cst {dimension_numbers = #tpu.dot_dimension_numbers<[1], [0], [0], [1], [0, 0, 1, 1], [], []>} : vector<256x32xbf16>, vector<32x128xbf16>, vector<256x128xf32> -> vector<256x128xf32>
    %c0_5 = arith.constant 0 : index
    %c0_6 = arith.constant 0 : index
    %8 = vector.load %arg5[%c0_5, %c0_6] : memref<1x128xf32, #tpu.memory_space<vmem>>, vector<1x128xf32>
    %9 = vector.broadcast %8 : vector<1x128xf32> to vector<256x128xf32>
    %10 = arith.addf %7, %9 : vector<256x128xf32>
    %cst_7 = arith.constant 0.000000e+00 : f32
    %11 = vector.broadcast %cst_7 : f32 to vector<256x128xf32>
    %12 = arith.maximumf %10, %11 : vector<256x128xf32>
    %c0_8 = arith.constant 0 : index
    %c0_9 = arith.constant 0 : index
    %13 = vector.load %arg9[%c0_8, %c0_9] : memref<8x128xf32, #tpu.memory_space<vmem>>, vector<8x128xf32>
    %cst_10 = arith.constant dense<0.000000e+00> : vector<128xf32>
    %14 = vector.multi_reduction <add>, %12, %cst_10 [0] : vector<256x128xf32> to vector<128xf32>
    %15 = vector.shape_cast %14 : vector<128xf32> to vector<1x128xf32>
    %16 = vector.broadcast %15 : vector<1x128xf32> to vector<8x128xf32>
    %17 = arith.addf %13, %16 : vector<8x128xf32>
    %c0_11 = arith.constant 0 : index
    %c0_12 = arith.constant 0 : index
    %18 = vector.load %arg9[%c0_11, %c0_12] : memref<8x128xf32, #tpu.memory_space<vmem>>, vector<8x128xf32>
    tpu.vector_store %arg9[%c0_11, %c0_12], %17 {strides = array<i32>} : memref<8x128xf32, #tpu.memory_space<vmem>>, vector<8x128xf32>,
    %c3_i32 = arith.constant 3 : i32
    %19 = arith.cmpi eq, %arg1, %c3_i32 : i32
    %c0_i32_13 = arith.constant 0 : i32
    %20 = arith.cmpi eq, %arg2, %c0_i32_13 : i32
    %21 = arith.andi %19, %20 : i1
    %22 = arith.extui %21 : i1 to i32
    %c0_i32_14 = arith.constant 0 : i32
    %23 = arith.cmpi ne, %22, %c0_i32_14 : i32
    scf.if %23 {
      %c0_15 = arith.constant 0 : index
      %c0_16 = arith.constant 0 : index
      %24 = vector.load %arg9[%c0_15, %c0_16] : memref<8x128xf32, #tpu.memory_space<vmem>>, vector<8x128xf32>
      %25 = arith.truncf %24 : vector<8x128xf32> to vector<8x128xbf16>
      %c0_17 = arith.constant 0 : index
      %c0_18 = arith.constant 0 : index
      %26 = vector.load %arg6[%c0_17, %c0_18] : memref<128x128xbf16, #tpu.memory_space<vmem>>, vector<128x128xbf16>
      %cst_19 = arith.constant dense<0.000000e+00> : vector<8x128xf32>
      %27 = tpu.matmul %25, %26, %cst_19 {dimension_numbers = #tpu.dot_dimension_numbers<[1], [0], [0], [1], [0, 0, 1, 1], [], []>} : vector<8x128xbf16>, vector<128x128xbf16>, vector<8x128xf32> -> vector<8x128xf32>
      %c0_20 = arith.constant 0 : index
      %c0_21 = arith.constant 0 : index
      %28 = vector.load %arg7[%c0_20, %c0_21] : memref<1x128xf32, #tpu.memory_space<vmem>>, vector<1x128xf32>
      %29 = vector.broadcast %28 : vector<1x128xf32> to vector<8x128xf32>
      %30 = arith.addf %27, %29 : vector<8x128xf32>
      %c0_22 = arith.constant 0 : index
      %c0_23 = arith.constant 0 : index
      %31 = vector.load %arg8[%c0_22, %c0_23] : memref<8x128xf32, #tpu.memory_space<vmem>>, vector<8x128xf32>
      tpu.vector_store %arg8[%c0_22, %c0_23], %30 {strides = array<i32>} : memref<8x128xf32, #tpu.memory_space<vmem>>, vector<8x128xf32>,
    } else {
    }
    return
  }
  func.func @transform_0(%arg0: i32, %arg1: i32, %arg2: i32) -> (i32, i32) {
    %c4_i32 = arith.constant 4 : i32
    %0 = arith.muli %arg0, %c4_i32 : i32
    %1 = arith.addi %0, %arg1 : i32
    %c1_i32 = arith.constant 1 : i32
    %2 = arith.muli %1, %c1_i32 : i32
    %3 = arith.addi %2, %arg2 : i32
    %c0_i32 = arith.constant 0 : i32
    %c0_i32_0 = arith.constant 0 : i32
    return %3, %c0_i32 : i32, i32
  }
  func.func @transform_1(%arg0: i32, %arg1: i32, %arg2: i32) -> (i32, i32) {
    %c0_i32 = arith.constant 0 : i32
    %c0_i32_0 = arith.constant 0 : i32
    %c0_i32_1 = arith.constant 0 : i32
    return %c0_i32, %c0_i32_0 : i32, i32
  }
  func.func @transform_2(%arg0: i32, %arg1: i32, %arg2: i32) -> (i32, i32) {
    %c0_i32 = arith.constant 0 : i32
    %c0_i32_0 = arith.constant 0 : i32
    %c0_i32_1 = arith.constant 0 : i32
    return %c0_i32, %c0_i32_0 : i32, i32
  }
  func.func @transform_3(%arg0: i32, %arg1: i32, %arg2: i32) -> (i32, i32) {
    %c0_i32 = arith.constant 0 : i32
    %c0_i32_0 = arith.constant 0 : i32
    %c0_i32_1 = arith.constant 0 : i32
    return %c0_i32, %c0_i32_0 : i32, i32
  }
  func.func @transform_4(%arg0: i32, %arg1: i32, %arg2: i32) -> (i32, i32) {
    %c0_i32 = arith.constant 0 : i32
    %c0_i32_0 = arith.constant 0 : i32
    %c0_i32_1 = arith.constant 0 : i32
    return %c0_i32, %c0_i32_0 : i32, i32
  }
  func.func @transform_5(%arg0: i32, %arg1: i32, %arg2: i32) -> (i32, i32) {
    %c0_i32 = arith.constant 0 : i32
    %c0_i32_0 = arith.constant 0 : i32
    return %arg0, %c0_i32 : i32, i32
  }
}

</mosaic_0001>

<bundles_post_ra>
// kernel: video_model_forward.1
= control target key start
LH: loop header
LB: loop body
LE: loop exit
PB: predicated region body
PF: predicated region fallthrough
CT: control target
= control target key end

     0   :  { %s1166_s18 = smov 0   ;;  %s1168_s19 = smov 0   ;;  %s1343_s0 = inlined_call_operand.vmem [shape: bf16[2048,32], index: 0, kind: input, shape index: {}]   ;;  %s1344_s1 = inlined_call_operand.vmem [shape: bf16[32,128], index: 1, kind: input, shape index: {}]   ;;  %s1345_s2 = inlined_call_operand.vmem [shape: f32[1,128], index: 2, kind: input, shape index: {}]   ;;  %s1346_s3 = inlined_call_operand.vmem [shape: bf16[128,128], index: 3, kind: input, shape index: {}]   ;;  %s1347_s4 = inlined_call_operand.vmem [shape: f32[1,128], index: 4, kind: input, shape index: {}]   ;;  %s1348_s5 = inlined_call_operand.vmem [shape: f32[16,128], index: 5, kind: output, shape index: {}]  }
   0x1   :  { %s1170_s20 = smov 0   ;;  %s1172_s21 = smov 0  }
   0x2   :  { %s1174_s22 = smov 0  }
   0x3 LB: > { %s30_s23 = sadd.s32 1, %s1123_s20  ;;  %s34_s24 = sadd.s32 1, %s1127_s21  ;;  %s1131_s22 = sphi %s1174_s22, %s15_s22   ;;  %s1127_s21 = sphi %s1172_s21, %s1352_s21   ;;  %s1123_s20 = sphi %s1170_s20, %s1351_s20   ;;  %s1119_s19 = sphi %s1168_s19, %s1350_s19   ;;  %s1115_s18 = sphi %s1166_s18, %s1349_s18  }
   0x4   : > { %p32_p0 = scmp.ge.s32.totalorder %s30_s23, 4  ;;  %p882_p1 = scmp.ge.s32.totalorder %s1131_s22, 1 }
   0x5   : > { %p219_p2 = scmp.lt.s32.totalorder %s1131_s22, 9 }
   0x6   : > { %s1354_s23 = smov (%p32_p0, %s30_s23), 0  ;;  %s1356_s24 = smov (!%p32_p0, %s34_s24), %s1127_s21 }
   0x7   : > { %p220_p3 = pnand %p882_p1, %p219_p2  ;;  %p36_p4 = scmp.ge.s32.totalorder %s1356_s24, 2 }
   0x8   : > { %s883_s25 = sshll.u32 (!%p220_p3), %s1119_s19, 2  ;;  %p261_p5 = scmp.lt.s32.totalorder (!%p220_p3), %s1119_s19, 1 }
   0x9   : > { %s1358_s24 = smov (%p36_p4, %s1356_s24), 0  ;;  %223 = sbr.rel (%p220_p3) target bundleno = 519 (0x207), region = 40 }
   0xa   : > { %s250_s26 = sadd.s32 (!%p220_p3), %s1115_s18, %s883_s25  ;;  %p266_p6 = scmp.eq.s32.totalorder (!%p220_p3), %s1115_s18, 0 }
   0xb   : > { %s884_s27 = sshll.u32 (!%p220_p3), %s250_s26, 5 }
   0xc   : > { %p253_p7 = scmp.lt.s32.totalorder (!%p220_p3), %s884_s27, 255 }
   0xe   : > { %s1360_s19 = smov (!%p261_p5, %s1119_s19), 1  ;;  %s1362_s27 = smov (!%p253_p7, %s884_s27), 255  ;;  %v1133_v0 = vmov (%p266_p6), 0.0  }
   0xf   : > { %s886_s28 = sshll.u32 %s1360_s19, 3  ;;  %s885_s29 = sshll.u32 %s1362_s27, 2  ;;  %272 = vst [vmem:[#allocation2] sm:$0xff] (%p266_p6), %v1133_v0 }
  0x10   : > { %s1203_s7 = scalar_lea.vmem %s1348_s5, %s886_s28  ;;  %s1208_s10 = scalar_lea.vmem %s1343_s0, %s885_s29 }
  0x11   : > { %271 = sbr.rel (!%p266_p6) target bundleno = 22 (0x16), region = 44 }
  0x16 PF: > { %v1067_v1 = vld [vmem:[%s1344_s1 + $0x8] sm:$0xff]   ;;  %v1068_v2 = vld [vmem:[%s1344_s1] sm:$0xff]   ;;  %vm408_vm0 = vcmask 261120   ;;  %v1071_v5 = vld [vmem:[%s1208_s10 + $0x10] sm:$0xff]   ;;  %p690_p8 = scmp.eq.s32.totalorder %s1115_s18, 3 }
  0x17   : > { %964 = vmatprep.subr.bf16.mxu0 %v1067_v1  ;;  %v1069_v3 = vld [vmem:[%s1208_s10] sm:$0xff]   ;;  %1020 = vmatprep.subr.bf16.mxu1 %v1067_v1  ;;  %v1070_v4 = vld [vmem:[%s1208_s10 + $0x8] sm:$0xff]   ;;  %v1079_v8 = vld [vmem:[%s1208_s10 + $0x50] sm:$0xff]   ;;  %vm1135_vm1 = vmmov (%p690_p8), 0  }
  0x18   : > { %965 = vmatpush3.bf16.msra.mxu0 %v1067_v1  ;;  %1022 = vmatpush3.bf16.msra.mxu1 %v1067_v1  ;;  %v1077_v6 = vld [vmem:[%s1208_s10 + $0x40] sm:$0xff]   ;;  %v1078_v7 = vld [vmem:[%s1208_s10 + $0x48] sm:$0xff]   ;;  %v1072_v9 = vld [vmem:[%s1208_s10 + $0x18] sm:$0xff]  }
  0x19   : > { %966 = vmatprep.subr.bf16.mxu0 %v1068_v2  ;;  %968 = vmatprep.mubr.msk.bf16.mxu0 %vm408_vm0, %v1069_v3  ;;  %v1073_v10 = vld [vmem:[%s1208_s10 + $0x20] sm:$0xff]   ;;  %v1080_v11 = vld [vmem:[%s1208_s10 + $0x58] sm:$0xff]   ;;  %v1074_v13 = vld [vmem:[%s1208_s10 + $0x28] sm:$0xff]  }
  0x1a   : > { %1021 = vmatprep.subr.bf16.mxu1 %v1068_v2  ;;  %984 = vmatprep.mubr.msk.bf16.mxu1 %vm408_vm0, %v1077_v6  ;;  %v1081_v12 = vld [vmem:[%s1208_s10 + $0x60] sm:$0xff]   ;;  %v1075_v14 = vld [vmem:[%s1208_s10 + $0x30] sm:$0xff]   ;;  %v1082_v15 = vld [vmem:[%s1208_s10 + $0x68] sm:$0xff]  }
  0x1b   : > { %v1083_v16 = vld [vmem:[%s1208_s10 + $0x70] sm:$0xff]   ;;  %v1076_v17 = vld [vmem:[%s1208_s10 + $0x38] sm:$0xff]   ;;  %v1254_v22 = vld [vmem:[%s1345_s2] ss:$0 sm:$0xff] }
  0x1c   : > { %967 = vmatpush3.bf16.msra.mxu0 %v1068_v2  ;;  %1023 = vmatpush3.bf16.msra.mxu1 %v1068_v2  ;;  %v1084_v18 = vld [vmem:[%s1208_s10 + $0x78] sm:$0xff]  }
  0x1f   : > { %969 = vmatmul.mubr.msk.bf16.vlgmr.msra.gmra.mxu0 %vm408_vm0, %v1070_v4  ;;  %985 = vmatmul.mubr.msk.bf16.vlgmr.msra.gmra.mxu1 %vm408_vm0, %v1078_v7 }
  0x20   : > { %972 = vmatprep.mubr.msk.bf16.mxu0 %vm408_vm0, %v1071_v5  ;;  %988 = vmatprep.mubr.msk.bf16.mxu1 %vm408_vm0, %v1079_v8 }
  0x27   : > { %973 = vmatmul.mubr.msk.bf16.gmra.mxu0 %vm408_vm0, %v1072_v9  ;;  %989 = vmatmul.mubr.msk.bf16.gmra.mxu1 %vm408_vm0, %v1080_v11 }
  0x28   : > { %976 = vmatprep.mubr.msk.bf16.mxu0 %vm408_vm0, %v1073_v10  ;;  %992 = vmatprep.mubr.msk.bf16.mxu1 %vm408_vm0, %v1081_v12 }
  0x2f   : > { %977 = vmatmul.mubr.msk.bf16.gmra.mxu0 %vm408_vm0, %v1074_v13  ;;  %993 = vmatmul.mubr.msk.bf16.gmra.mxu1 %vm408_vm0, %v1082_v15 }
  0x30   : > { %980 = vmatprep.mubr.msk.bf16.mxu0 %vm408_vm0, %v1075_v14  ;;  %996 = vmatprep.mubr.msk.bf16.mxu1 %vm408_vm0, %v1083_v16 }
  0x37   : > { %981 = vmatmul.mubr.msk.bf16.gmra.mxu0 %vm408_vm0, %v1076_v17  ;;  %997 = vmatmul.mubr.msk.bf16.gmra.mxu1 %vm408_vm0, %v1084_v18 }
  0xdf   : > { %v970_v19 = vpop.f32.mrf.mxu0  ;;  %v1249_v21 = vpop.f32.mrf.mxu1 }
  0xe0   : > { %v500_v27 = vadd.f32 %v970_v19, %v1254_v22 }
  0xe1   : > { %v491_v20 = vpop.f32.mrf.mxu0  ;;  %v1257_v25 = vpop.f32.mrf.mxu1 }
  0xe2   : > { %v492_v24 = vadd.f32 %v1254_v22, %v491_v20  ;;  %v620_v36 = vmax.f32 %v500_v27, 0.0 }
  0xe3   : > { %v971_v23 = vpop.f32.mrf.mxu0  ;;  %v1261_v29 = vpop.f32.mrf.mxu1 }
  0xe4   : > { %v618_v31 = vmax.f32 %v492_v24, 0.0  ;;  %v503_v32 = vadd.f32 %v971_v23, %v1254_v22 }
  0xe5   : > { %v494_v26 = vpop.f32.mrf.mxu0  ;;  %v558_v35 = vpop.f32.mrf.mxu1 }
  0xe6   : > { %v495_v28 = vadd.f32 %v1254_v22, %v494_v26  ;;  %v621_v40 = vmax.f32 %v503_v32, 0.0 }
  0xe7   : > { %v974_v30 = vpop.f32.mrf.mxu0  ;;  %v1265_v43 = vpop.f32.mrf.mxu1 }
  0xe8   : > { %v619_v33 = vmax.f32 %v495_v28, 0.0  ;;  %v516_v44 = vadd.f32 %v974_v30, %v1254_v22  ;;  %v556_v28 = vadd.f32 %v1254_v22, %v1257_v25 }
  0xe9   : > { %v507_v34 = vpop.f32.mrf.mxu0  ;;  %v571_v53 = vpop.f32.mrf.mxu1 }
  0xea   : > { %v651_v37 = vadd.f32 %v619_v33, %v618_v31  ;;  %v508_v38 = vadd.f32 %v1254_v22, %v507_v34  ;;  %v624_v54 = vmax.f32 %v516_v44, 0.0  ;;  %v559_v33 = vadd.f32 %v1254_v22, %v558_v35 }
  0xeb   : > { %v975_v39 = vpop.f32.mrf.mxu0  ;;  %v991_v61 = vpop.f32.mrf.mxu1  ;;  %v572_v25 = vadd.f32 %v1254_v22, %v571_v53 }
  0xec   : > { %v652_v41 = vadd.f32 %v651_v37, %v620_v36  ;;  %v622_v45 = vmax.f32 %v508_v38, 0.0  ;;  %v519_v50 = vadd.f32 %v975_v39, %v1254_v22  ;;  %v564_v36 = vadd.f32 %v1249_v21, %v1254_v22 }
  0xed   : > { %v510_v42 = vpop.f32.mrf.mxu0  ;;  %v574_v7 = vpop.f32.mrf.mxu1  ;;  %v634_v37 = vmax.f32 %v556_v28, 0.0  ;;  %v567_v39 = vadd.f32 %v1261_v29, %v1254_v22  ;;  %v580_v21 = vadd.f32 %v1265_v43, %v1254_v22  ;;  %v583_v29 = vadd.f32 %v991_v61, %v1254_v22  ;;  %v650_v28 = vld [vmem:[#allocation2] sm:$0xff] }
  0xee   : > { %v653_v46 = vadd.f32 %v652_v41, %v621_v40  ;;  %v511_v47 = vadd.f32 %v1254_v22, %v510_v42  ;;  %v625_v58 = vmax.f32 %v519_v50, 0.0  ;;  %v635_v40 = vmax.f32 %v559_v33, 0.0  ;;  %v1086_v33 = vld [vmem:[%s1346_s3 + $0x30] sm:$0xff] (%p690_p8)  }
  0xef   : > { %v978_v48 = vpop.f32.mrf.mxu0  ;;  %v994_v15 = vpop.f32.mrf.mxu1  ;;  %v636_v44 = vmax.f32 %v564_v36, 0.0  ;;  %v575_v35 = vadd.f32 %v1254_v22, %v574_v7  ;;  %v641_v53 = vmax.f32 %v583_v29, 0.0  ;;  %v1088_v36 = vld [vmem:[%s1346_s3 + $0x20] sm:$0xff] (%p690_p8)  }
  0xf0   : > { %v654_v49 = vadd.f32 %v653_v46, %v622_v45  ;;  %v623_v51 = vmax.f32 %v511_v47, 0.0  ;;  %v532_v62 = vadd.f32 %v978_v48, %v1254_v22  ;;  %v637_v46 = vmax.f32 %v567_v39, 0.0  ;;  %v1091_v39 = vld [vmem:[%s1346_s3 + $0x8] sm:$0xff] (%p690_p8)  }
  0xf1   : > { %v523_v52 = vpop.f32.mrf.mxu0  ;;  %v587_v26 = vpop.f32.mrf.mxu1 }
  0xf2   : > { %v655_v55 = vadd.f32 %v654_v49, %v623_v51  ;;  %v524_v56 = vadd.f32 %v1254_v22, %v523_v52  ;;  %v628_v8 = vmax.f32 %v532_v62, 0.0  ;;  %v638_v49 = vmax.f32 %v572_v25, 0.0 }
  0xf3   : > { %v979_v57 = vpop.f32.mrf.mxu0  ;;  %v995_v34 = vpop.f32.mrf.mxu1  ;;  %v639_v52 = vmax.f32 %v575_v35, 0.0  ;;  %v596_v62 = vadd.f32 %v994_v15, %v1254_v22 }
  0xf4   : > { %v656_v59 = vadd.f32 %v655_v55, %v624_v54  ;;  %v626_v63 = vmax.f32 %v524_v56, 0.0  ;;  %v535_v4 = vadd.f32 %v979_v57, %v1254_v22  ;;  %v640_v55 = vmax.f32 %v580_v21, 0.0 }
  0xf5   : > { %v526_v60 = vpop.f32.mrf.mxu0  ;;  %v590_v42 = vpop.f32.mrf.mxu1  ;;  %v588_v57 = vadd.f32 %v1254_v22, %v587_v26 }
  0xf6   : > { %v657_v0 = vadd.f32 %v656_v59, %v625_v58  ;;  %v527_v1 = vadd.f32 %v1254_v22, %v526_v60  ;;  %v629_v12 = vmax.f32 %v535_v4, 0.0  ;;  %v591_v59 = vadd.f32 %v1254_v22, %v590_v42 }
  0xf7   : > { %v982_v2 = vpop.f32.mrf.mxu0  ;;  %v998_v48 = vpop.f32.mrf.mxu1 }
  0xf8   : > { %v658_v3 = vadd.f32 %v657_v0, %v626_v63  ;;  %v627_v5 = vmax.f32 %v527_v1, 0.0  ;;  %v548_v16 = vadd.f32 %v982_v2, %v1254_v22  ;;  %v642_v63 = vmax.f32 %v588_v57, 0.0 }
  0xf9   : > { %v539_v6 = vpop.f32.mrf.mxu0  ;;  %v603_v54 = vpop.f32.mrf.mxu1  ;;  %v599_v1 = vadd.f32 %v995_v34, %v1254_v22  ;;  %v643_v2 = vmax.f32 %v591_v59, 0.0  ;;  %v1087_v34 = vld [vmem:[%s1346_s3 + $0x28] sm:$0xff] (%p690_p8)  }
  0xfa   : > { %v659_v9 = vadd.f32 %v658_v3, %v627_v5  ;;  %v540_v10 = vadd.f32 %v1254_v22, %v539_v6  ;;  %v632_v27 = vmax.f32 %v548_v16, 0.0  ;;  %v644_v3 = vmax.f32 %v596_v62, 0.0 }
  0xfb   : > { %v983_v11 = vpop.f32.mrf.mxu0  ;;  %v999_v60 = vpop.f32.mrf.mxu1  ;;  %v604_v5 = vadd.f32 %v1254_v22, %v603_v54  ;;  %v645_v6 = vmax.f32 %v599_v1, 0.0 }
  0xfc   : > { %v660_v13 = vadd.f32 %v659_v9, %v628_v8  ;;  %v630_v17 = vmax.f32 %v540_v10, 0.0  ;;  %v551_v23 = vadd.f32 %v983_v11, %v1254_v22  ;;  %v612_v9 = vadd.f32 %v998_v48, %v1254_v22 }
  0xfd   : > { %v542_v14 = vpop.f32.mrf.mxu0  ;;  %v606_v61 = vpop.f32.mrf.mxu1  ;;  %v646_v10 = vmax.f32 %v604_v5, 0.0 }
  0xfe   : > { %v661_v18 = vadd.f32 %v660_v13, %v629_v12  ;;  %v543_v19 = vadd.f32 %v1254_v22, %v542_v14  ;;  %v633_v31 = vmax.f32 %v551_v23, 0.0  ;;  %v607_v8 = vadd.f32 %v1254_v22, %v606_v61 }
  0xff   : > { %v615_v13 = vadd.f32 %v999_v60, %v1254_v22  ;;  %v648_v15 = vmax.f32 %v612_v9, 0.0  ;;  %v1085_v22 = vld [vmem:[%s1346_s3 + $0x38] sm:$0xff] (%p690_p8)  }
 0x100   : > { %v662_v20 = vadd.f32 %v661_v18, %v630_v17  ;;  %v631_v24 = vmax.f32 %v543_v19, 0.0  ;;  %v647_v14 = vmax.f32 %v607_v8, 0.0 }
 0x101   : > { %v649_v17 = vmax.f32 %v615_v13, 0.0 }
 0x102   : > { %v663_v30 = vadd.f32 %v662_v20, %v631_v24 }
 0x104   : > { %v664_v32 = vadd.f32 %v663_v30, %v632_v27 }
 0x106   : > { %v665_v38 = vadd.f32 %v664_v32, %v633_v31  ;;  %v1134_v32 = vmov (%p690_p8), 0.0  }
 0x107   : > { %1000 = vmatprep.subr.bf16.mxu0 (%p690_p8), %v1134_v32  ;;  %1016 = vmatprep.mubr.msk.bf16.mxu0 (%p690_p8), %vm1135_vm1, %v1134_v32 }
 0x108   : > { %v666_v41 = vadd.f32 %v665_v38, %v634_v37  ;;  %1001 = vmatpush3.bf16.msra.mxu0 (%p690_p8), %v1085_v22  ;;  %v1089_v37 = vld [vmem:[%s1346_s3 + $0x18] sm:$0xff] (%p690_p8)   ;;  %v1090_v38 = vld [vmem:[%s1346_s3 + $0x10] sm:$0xff] (%p690_p8)  }
 0x109   : > { %1002 = vmatprep.subr.bf16.mxu0 (%p690_p8), %v1134_v32 }
 0x10a   : > { %v667_v45 = vadd.f32 %v666_v41, %v635_v40  ;;  %v1092_v40 = vld [vmem:[%s1346_s3] sm:$0xff] (%p690_p8)  }
 0x10c   : > { %v668_v47 = vadd.f32 %v667_v45, %v636_v44  ;;  %1003 = vmatpush3.bf16.msra.mxu0 (%p690_p8), %v1086_v33  ;;  %v924_v44 = vld [vmem:[%s1347_s4] ss:$0 sm:$0xff] (%p690_p8) }
 0x10d   : > { %1004 = vmatprep.subr.bf16.mxu0 (%p690_p8), %v1134_v32 }
 0x10e   : > { %v669_v50 = vadd.f32 %v668_v47, %v637_v46 }
 0x110   : > { %v670_v51 = vadd.f32 %v669_v50, %v638_v49  ;;  %1005 = vmatpush3.bf16.msra.mxu0 (%p690_p8), %v1087_v34 }
 0x111   : > { %1006 = vmatprep.subr.bf16.mxu0 (%p690_p8), %v1134_v32 }
 0x112   : > { %v671_v56 = vadd.f32 %v670_v51, %v639_v52 }
 0x114   : > { %v672_v58 = vadd.f32 %v671_v56, %v640_v55  ;;  %1007 = vmatpush3.bf16.msra.mxu0 (%p690_p8), %v1088_v36 }
 0x115   : > { %1008 = vmatprep.subr.bf16.mxu0 (%p690_p8), %v1134_v32 }
 0x116   : > { %v673_v43 = vadd.f32 %v672_v58, %v641_v53 }
 0x118   : > { %v674_v0 = vadd.f32 %v673_v43, %v642_v63  ;;  %1009 = vmatpush3.bf16.msra.mxu0 (%p690_p8), %v1089_v37 }
 0x119   : > { %1010 = vmatprep.subr.bf16.mxu0 (%p690_p8), %v1134_v32 }
 0x11a   : > { %v675_v4 = vadd.f32 %v674_v0, %v643_v2 }
 0x11c   : > { %v676_v7 = vadd.f32 %v675_v4, %v644_v3  ;;  %1011 = vmatpush3.bf16.msra.mxu0 (%p690_p8), %v1090_v38 }
 0x11d   : > { %1012 = vmatprep.subr.bf16.mxu0 (%p690_p8), %v1134_v32 }
 0x11e   : > { %v677_v11 = vadd.f32 %v676_v7, %v645_v6 }
 0x120   : > { %v678_v12 = vadd.f32 %v677_v11, %v646_v10  ;;  %1013 = vmatpush3.bf16.msra.mxu0 (%p690_p8), %v1091_v39 }
 0x121   : > { %1014 = vmatprep.subr.bf16.mxu0 (%p690_p8), %v1134_v32 }
 0x122   : > { %v679_v16 = vadd.f32 %v678_v12, %v647_v14 }
 0x124   : > { %v680_v18 = vadd.f32 %v679_v16, %v648_v15  ;;  %1015 = vmatpush3.bf16.msra.mxu0 (%p690_p8), %v1092_v40 }
 0x126   : > { %v681_v19 = vadd.f32 %v680_v18, %v649_v17 }
 0x128   : > { %v682_v20 = vrot.slane %v681_v19, 4 }
 0x12a   : > { %v683_v23 = vadd.f32 %v682_v20, %v681_v19 }
 0x12c   : > { %v684_v24 = vrot.slane %v683_v23, 2 }
 0x12e   : > { %v685_v26 = vadd.f32 %v684_v24, %v683_v23 }
 0x130   : > { %v686_v27 = vrot.slane %v685_v26, 1 }
 0x132   : > { %v687_v30 = vadd.f32 %v686_v27, %v685_v26  ;;  %694 = sbr.rel (!%p690_p8) target bundleno = 519 (0x207), region = 48 }
 0x134   : > { %v688_v31 = vadd.f32 %v687_v30, %v650_v28 }
 0x136   : > { %689 = vst [vmem:[#allocation2] sm:$0xff] %v688_v31 }
 0x13d   : > { %v695_v41 = vld [vmem:[#allocation2] sm:$0xff] }
 0x13e   : > { %v696_v42 = vpack.c.bf16 %v695_v41, %v695_v41 }
 0x140   : > { %1017 = vmatmul.mubr.bf16.vlgmr.msra.gmra.mxu0 %v696_v42 }
 0x200   : > { %v802_v45 = vpop.f32.mrf.mxu0 }
 0x201   : > { %v803_v25 = vadd.f32 %v924_v44, %v802_v45 }
 0x202   : > { %v1018_v46 = vpop.f32.mrf.mxu0 }
 0x203   : > { %808 = vst [vmem:[%s1203_s7] sm:$0xff] %v803_v25 }
 0x204   : > { %v805_v47 = vpop.f32.mrf.mxu0 }
 0x206   : > { %v1019_v35 = vpop.f32.mrf.mxu0 }
 0x207 PF: > { %s15_s22 = sadd.s32 1, %s1131_s22   ;;  %s1349_s18 = smov %s1123_s20 }
 0x208   : > { %p12_p9 = scmp.ge.s32.totalorder %s15_s22, 10   ;;  %s1350_s19 = smov %s1127_s21 }
 0x209   : > { %s1351_s20 = smov %s1354_s23  ;;  %s1352_s21 = smov %s1358_s24 }
 0x20a   :  { %14 = sbr.rel (!%p12_p9) target bundleno = 3 (0x3), region = 78 }

</bundles_post_ra>
